<compile_context>
chip_gen: v6e
topology: v6e:2x2x1
jax: 0.10.0
libtpu: 0.0.40
codegen_flags: <defaults>
</compile_context>

<pallas_src>
import functools

import jax
import jax.numpy as jnp
from jax import lax
from jax.experimental import pallas as pl
from jax.experimental.pallas import tpu as pltpu

NUM_CLASSES = 10
NUM_INPUT = 2 * NUM_CLASSES  # 20
P_DROP1 = 0.3
P_DROP2 = 0.2
TB_MAX = 2048  # batch tile rows (multiple of 128)

# Hardware PRNG lowers on real TPUs (Mosaic); keep a portable hash only for the
# CPU interpret fallback.  Decided at trace time.
_ON_TPU = jax.devices()[0].platform == "tpu"


def _round_up(n, m):
    return (n + m - 1) // m * m


def _signed_threshold(rate):
    # bits uniform over the full signed int32 range: P(bits >= t) == 1 - rate
    return jnp.int32(int(round(rate * (1 << 32))) - (1 << 31))


def _keep_mask_hw(shape, rate):
    bits = pltpu.prng_random_bits(shape)
    if bits.dtype != jnp.int32:
        bits = pltpu.bitcast(bits, jnp.int32)
    return bits >= _signed_threshold(rate)


def _keep_mask_sw(shape, rate, seed, tile, salt):
    # Slim stateless integer hash -- interpret/CPU fallback only.
    rows = lax.broadcasted_iota(jnp.uint32, shape, 0)
    cols = lax.broadcasted_iota(jnp.uint32, shape, 1)
    x = rows * jnp.uint32(shape[1]) + cols
    x = x + seed.astype(jnp.uint32) * jnp.uint32(0x9E3779B1)
    x = x + tile.astype(jnp.uint32) * jnp.uint32(0x85EBCA77)
    x = x + jnp.uint32((salt * 0xC2B2AE3D) & 0xFFFFFFFF)
    x = x ^ (x >> 16)
    x = x * jnp.uint32(0x7FEB352D)
    x = x ^ (x >> 15)
    return x >= jnp.uint32(int(round(rate * (1 << 32))) & 0xFFFFFFFF)


def _dropout(h, rate, use_hw_prng, seed, tile, salt):
    """Inverted dropout keep/drop only; the 1/(1-p) scale is folded into the next
    layer's weights on the host. Bernoulli stream necessarily differs from torch."""
    if use_hw_prng:
        keep = _keep_mask_hw(h.shape, rate)
    else:
        keep = _keep_mask_sw(h.shape, rate, seed, tile, salt)
    return jnp.where(keep, h, 0.0)


def net_mia_kernel(seed_ref,
                   x_ref,
                   w1_ref, b1_ref,
                   w2_ref, b2_ref,
                   w3_ref, b3_ref,
                   w4_ref, b4_ref,
                   out_ref,
                   *, use_hw_prng):
    seed = seed_ref[0]
    tile = pl.program_id(0)
    if use_hw_prng:
        pltpu.prng_seed(seed, tile)  # independent stream per batch tile

    x = x_ref[...].astype(jnp.bfloat16)                                # (TB, 20)

    h1 = jnp.dot(x, w1_ref[...], preferred_element_type=jnp.float32) + b1_ref[...]
    h1 = jnp.maximum(h1, 0.0)
    h1 = _dropout(h1, P_DROP1, use_hw_prng, seed, tile, 1)             # (TB, 128)

    h2 = jnp.dot(h1.astype(jnp.bfloat16), w2_ref[...],
                 preferred_element_type=jnp.float32) + b2_ref[...]
    h2 = jnp.maximum(h2, 0.0)
    h2 = _dropout(h2, P_DROP2, use_hw_prng, seed, tile, 2)             # (TB, 64)

    h3 = jnp.dot(h2.astype(jnp.bfloat16), w3_ref[...],
                 preferred_element_type=jnp.float32) + b3_ref[...]
    h3 = jnp.maximum(h3, 0.0)                                          # (TB, 64)

    # lin4 (64 -> 1) as an NT MXU matmul producing a LANE-DENSE (1, TB) row:
    #   (1, 64) contract (TB, 64) on their last dims -> (1, TB)
    logits = lax.dot_general(
        w4_ref[...], h3.astype(jnp.bfloat16),
        dimension_numbers=(((1,), (1,)), ((), ())),
        preferred_element_type=jnp.float32) + b4_ref[...]
    sig = pl.reciprocal(1.0 + jnp.exp(-logits), approx=True)
    out_ref[...] = jnp.clip(sig, 0.0, 1.0)


def init_params(key):
    """Deterministic init mimicking nn.Linear default (U(-1/sqrt(fan_in), +)).
    Weights stored as (in_features, out_features) so each layer is x @ W + b."""
    dims = [(NUM_INPUT, 128), (128, 64), (64, 64), (64, 1)]
    params = []
    for (fan_in, fan_out) in dims:
        key, kw, kb = jax.random.split(key, 3)
        bound = 1.0 / (fan_in ** 0.5)
        w = jax.random.uniform(kw, (fan_in, fan_out), jnp.float32, -bound, bound)
        b = jax.random.uniform(kb, (1, fan_out), jnp.float32, -bound, bound)
        params += [w, b]
    return params


def _choose_tile(batch):
    # Largest tile up to TB_MAX, but ~ceil(batch/2) so big batches keep >= 2 grid
    # steps (v7x megacore); multiple of 128 so the (1, tb) output block is
    # lane-aligned.
    half = _round_up(-(-batch // 2), 128)
    return max(128, min(TB_MAX, half))


@jax.jit
def net_mia_forward(x, params, seed):
    w1, b1, w2, b2, w3, b3, w4, b4 = params

    # glue: x.view(-1, num_input)
    x2 = x.reshape(-1, NUM_INPUT).astype(jnp.float32)
    batch = x2.shape[0]

    tb = _choose_tile(batch)
    batch_p = _round_up(batch, tb)
    if batch_p != batch:
        x2 = jnp.pad(x2, ((0, batch_p - batch), (0, 0)))
    grid = (batch_p // tb,)

    # Fold inverted-dropout keep-scales into the next layer's weights; bf16 MXU
    # operands (accumulation stays f32 in the kernel); biases stay f32.
    w1b = w1.astype(jnp.bfloat16)
    w2b = (w2 * jnp.float32(1.0 / (1.0 - P_DROP1))).astype(jnp.bfloat16)
    w3b = (w3 * jnp.float32(1.0 / (1.0 - P_DROP2))).astype(jnp.bfloat16)
    w4b = w4.reshape(1, 64).astype(jnp.bfloat16)   # row vector for the NT matmul

    seed_arr = jnp.asarray(seed, jnp.int32).reshape(1)

    const = lambda i: (0, 0)
    kernel = functools.partial(net_mia_kernel, use_hw_prng=_ON_TPU)
    out = pl.pallas_call(
        kernel,
        grid=grid,
        out_shape=jax.ShapeDtypeStruct((1, batch_p), jnp.float32),
        in_specs=[
            pl.BlockSpec(memory_space=pltpu.MemorySpace.SMEM),     # seed scalar
            pl.BlockSpec((tb, NUM_INPUT), lambda i: (i, 0)),       # x tile
            pl.BlockSpec((NUM_INPUT, 128), const),                 # W1 (resident)
            pl.BlockSpec((1, 128), const),                         # b1
            pl.BlockSpec((128, 64), const),                        # W2 (scaled)
            pl.BlockSpec((1, 64), const),                          # b2
            pl.BlockSpec((64, 64), const),                         # W3 (scaled)
            pl.BlockSpec((1, 64), const),                          # b3
            pl.BlockSpec((1, 64), const),                          # W4 row
            pl.BlockSpec((1, 1), const),                           # b4
        ],
        out_specs=pl.BlockSpec((1, tb), lambda i: (0, i)),         # lane-dense row
        compiler_params=pltpu.CompilerParams(
            dimension_semantics=("parallel",)),
    )(seed_arr, x2, w1b, b1, w2b, b2, w3b, b3, w4b, b4)

    # glue: .flatten() (drop batch padding)
    return out.reshape(-1)[:batch]


if __name__ == "__main__":
    key = jax.random.PRNGKey(0)
    key, kx, kp = jax.random.split(key, 3)

    # MIA attack features: 2*num_classes = 20 per row; (8, 2, 10) gets
    # view(-1, 20)'d inside the wrapper, matching torch.
    x = jax.random.normal(kx, (8, 2, NUM_CLASSES), jnp.float32)
    params = init_params(kp)

    out = net_mia_forward(x, params, 1234)
    out = jax.block_until_ready(out)

    assert out.shape == (8,), out.shape
    assert bool(jnp.all((out >= 0.0) & (out <= 1.0)))
    print("KERNEL_OK")
</pallas_src>

<mosaic_0001>
module attributes {stable_mosaic.version = 11 : i64} {
  func.func @net_mia_kernel(%arg0: i32, %arg1: memref<1xi32, #tpu.memory_space<smem>>, %arg2: memref<128x20xf32, #tpu.memory_space<vmem>>, %arg3: memref<20x128xbf16, #tpu.memory_space<vmem>>, %arg4: memref<1x128xf32, #tpu.memory_space<vmem>>, %arg5: memref<128x64xbf16, #tpu.memory_space<vmem>>, %arg6: memref<1x64xf32, #tpu.memory_space<vmem>>, %arg7: memref<64x64xbf16, #tpu.memory_space<vmem>>, %arg8: memref<1x64xf32, #tpu.memory_space<vmem>>, %arg9: memref<1x64xbf16, #tpu.memory_space<vmem>>, %arg10: memref<1x1xf32, #tpu.memory_space<vmem>>, %arg11: memref<1x128xf32, #tpu.memory_space<vmem>>) attributes {dimension_semantics = [#tpu.dimension_semantics<parallel>], iteration_bounds = array<i64: 1>, scalar_prefetch = 0 : i64, scratch_operands = 0 : i64, tpu.core_type = #tpu.core_type<tc>, window_params = [{transform_indices = @transform_0, window_bounds = array<i64: 1>}, {transform_indices = @transform_1, window_bounds = array<i64: 128, 20>}, {pipeline_mode = #tpu.pipeline_mode<synchronous>, transform_indices = @transform_2, window_bounds = array<i64: 20, 128>}, {pipeline_mode = #tpu.pipeline_mode<synchronous>, transform_indices = @transform_3, window_bounds = array<i64: 1, 128>}, {pipeline_mode = #tpu.pipeline_mode<synchronous>, transform_indices = @transform_4, window_bounds = array<i64: 128, 64>}, {pipeline_mode = #tpu.pipeline_mode<synchronous>, transform_indices = @transform_5, window_bounds = array<i64: 1, 64>}, {pipeline_mode = #tpu.pipeline_mode<synchronous>, transform_indices = @transform_6, window_bounds = array<i64: 64, 64>}, {pipeline_mode = #tpu.pipeline_mode<synchronous>, transform_indices = @transform_7, window_bounds = array<i64: 1, 64>}, {pipeline_mode = #tpu.pipeline_mode<synchronous>, transform_indices = @transform_8, window_bounds = array<i64: 1, 64>}, {pipeline_mode = #tpu.pipeline_mode<synchronous>, transform_indices = @transform_9, window_bounds = array<i64: 1, 1>}, {transform_indices = @transform_10, window_bounds = array<i64: 1, 128>}]} {
    %c0 = arith.constant 0 : index
    %0 = memref.load %arg1[%c0] : memref<1xi32, #tpu.memory_space<smem>>
    %c0_0 = arith.constant 0 : index
    %c0_1 = arith.constant 0 : index
    %1 = vector.load %arg2[%c0_0, %c0_1] : memref<128x20xf32, #tpu.memory_space<vmem>>, vector<128x20xf32>
    %2 = arith.truncf %1 : vector<128x20xf32> to vector<128x20xbf16>
    %c0_2 = arith.constant 0 : index
    %c0_3 = arith.constant 0 : index
    %3 = vector.load %arg3[%c0_2, %c0_3] : memref<20x128xbf16, #tpu.memory_space<vmem>>, vector<20x128xbf16>
    %cst = arith.constant dense<0.000000e+00> : vector<128x128xf32>
    %4 = tpu.matmul %2, %3, %cst {dimension_numbers = #tpu.dot_dimension_numbers<[1], [0], [0], [1], [0, 0, 1, 1], [], []>} : vector<128x20xbf16>, vector<20x128xbf16>, vector<128x128xf32> -> vector<128x128xf32>
    %c0_4 = arith.constant 0 : index
    %c0_5 = arith.constant 0 : index
    %5 = vector.load %arg4[%c0_4, %c0_5] : memref<1x128xf32, #tpu.memory_space<vmem>>, vector<1x128xf32>
    %6 = vector.broadcast %5 : vector<1x128xf32> to vector<128x128xf32>
    %7 = arith.addf %4, %6 : vector<128x128xf32>
    %cst_6 = arith.constant 0.000000e+00 : f32
    %8 = vector.broadcast %cst_6 : f32 to vector<128x128xf32>
    %9 = arith.maximumf %7, %8 : vector<128x128xf32>
    %10 = tpu.iota {dimensions = array<i32: 0>} : vector<128x128xi32>
    %11 = tpu.iota {dimensions = array<i32: 1>} : vector<128x128xi32>
    %c128_i32 = arith.constant 128 : i32
    %12 = vector.broadcast %c128_i32 : i32 to vector<128x128xi32>
    %13 = arith.muli %10, %12 : vector<128x128xi32>
    %14 = arith.addi %13, %11 : vector<128x128xi32>
    %c-1640531535_i32 = arith.constant -1640531535 : i32
    %15 = arith.muli %0, %c-1640531535_i32 : i32
    %16 = vector.broadcast %15 : i32 to vector<128x128xi32>
    %17 = arith.addi %14, %16 : vector<128x128xi32>
    %c-2048144777_i32 = arith.constant -2048144777 : i32
    %18 = arith.muli %arg0, %c-2048144777_i32 : i32
    %19 = vector.broadcast %18 : i32 to vector<128x128xi32>
    %20 = arith.addi %17, %19 : vector<128x128xi32>
    %c-1028477379_i32 = arith.constant -1028477379 : i32
    %21 = vector.broadcast %c-1028477379_i32 : i32 to vector<128x128xi32>
    %22 = arith.addi %20, %21 : vector<128x128xi32>
    %c16_i32 = arith.constant 16 : i32
    %23 = vector.broadcast %c16_i32 : i32 to vector<128x128xi32>
    %24 = arith.shrui %22, %23 : vector<128x128xi32>
    %25 = arith.xori %22, %24 : vector<128x128xi32>
    %c2146121005_i32 = arith.constant 2146121005 : i32
    %26 = vector.broadcast %c2146121005_i32 : i32 to vector<128x128xi32>
    %27 = arith.muli %25, %26 : vector<128x128xi32>
    %c15_i32 = arith.constant 15 : i32
    %28 = vector.broadcast %c15_i32 : i32 to vector<128x128xi32>
    %29 = arith.shrui %27, %28 : vector<128x128xi32>
    %30 = arith.xori %27, %29 : vector<128x128xi32>
    %c1288490189_i32 = arith.constant 1288490189 : i32
    %31 = vector.broadcast %c1288490189_i32 : i32 to vector<128x128xi32>
    %32 = arith.cmpi uge, %30, %31 : vector<128x128xi32>
    %cst_7 = arith.constant 0.000000e+00 : f32
    %33 = vector.broadcast %cst_7 : f32 to vector<128x128xf32>
    %34 = arith.select %32, %9, %33 : vector<128x128xi1>, vector<128x128xf32>
    %35 = arith.truncf %34 : vector<128x128xf32> to vector<128x128xbf16>
    %c0_8 = arith.constant 0 : index
    %c0_9 = arith.constant 0 : index
    %36 = vector.load %arg5[%c0_8, %c0_9] : memref<128x64xbf16, #tpu.memory_space<vmem>>, vector<128x64xbf16>
    %cst_10 = arith.constant dense<0.000000e+00> : vector<128x64xf32>
    %37 = tpu.matmul %35, %36, %cst_10 {dimension_numbers = #tpu.dot_dimension_numbers<[1], [0], [0], [1], [0, 0, 1, 1], [], []>} : vector<128x128xbf16>, vector<128x64xbf16>, vector<128x64xf32> -> vector<128x64xf32>
    %c0_11 = arith.constant 0 : index
    %c0_12 = arith.constant 0 : index
    %38 = vector.load %arg6[%c0_11, %c0_12] : memref<1x64xf32, #tpu.memory_space<vmem>>, vector<1x64xf32>
    %39 = vector.broadcast %38 : vector<1x64xf32> to vector<128x64xf32>
    %40 = arith.addf %37, %39 : vector<128x64xf32>
    %cst_13 = arith.constant 0.000000e+00 : f32
    %41 = vector.broadcast %cst_13 : f32 to vector<128x64xf32>
    %42 = arith.maximumf %40, %41 : vector<128x64xf32>
    %43 = tpu.iota {dimensions = array<i32: 0>} : vector<128x64xi32>
    %44 = tpu.iota {dimensions = array<i32: 1>} : vector<128x64xi32>
    %c64_i32 = arith.constant 64 : i32
    %45 = vector.broadcast %c64_i32 : i32 to vector<128x64xi32>
    %46 = arith.muli %43, %45 : vector<128x64xi32>
    %47 = arith.addi %46, %44 : vector<128x64xi32>
    %c-1640531535_i32_14 = arith.constant -1640531535 : i32
    %48 = arith.muli %0, %c-1640531535_i32_14 : i32
    %49 = vector.broadcast %48 : i32 to vector<128x64xi32>
    %50 = arith.addi %47, %49 : vector<128x64xi32>
    %c-2048144777_i32_15 = arith.constant -2048144777 : i32
    %51 = arith.muli %arg0, %c-2048144777_i32_15 : i32
    %52 = vector.broadcast %51 : i32 to vector<128x64xi32>
    %53 = arith.addi %50, %52 : vector<128x64xi32>
    %c-2056954758_i32 = arith.constant -2056954758 : i32
    %54 = vector.broadcast %c-2056954758_i32 : i32 to vector<128x64xi32>
    %55 = arith.addi %53, %54 : vector<128x64xi32>
    %c16_i32_16 = arith.constant 16 : i32
    %56 = vector.broadcast %c16_i32_16 : i32 to vector<128x64xi32>
    %57 = arith.shrui %55, %56 : vector<128x64xi32>
    %58 = arith.xori %55, %57 : vector<128x64xi32>
    %c2146121005_i32_17 = arith.constant 2146121005 : i32
    %59 = vector.broadcast %c2146121005_i32_17 : i32 to vector<128x64xi32>
    %60 = arith.muli %58, %59 : vector<128x64xi32>
    %c15_i32_18 = arith.constant 15 : i32
    %61 = vector.broadcast %c15_i32_18 : i32 to vector<128x64xi32>
    %62 = arith.shrui %60, %61 : vector<128x64xi32>
    %63 = arith.xori %60, %62 : vector<128x64xi32>
    %c858993459_i32 = arith.constant 858993459 : i32
    %64 = vector.broadcast %c858993459_i32 : i32 to vector<128x64xi32>
    %65 = arith.cmpi uge, %63, %64 : vector<128x64xi32>
    %cst_19 = arith.constant 0.000000e+00 : f32
    %66 = vector.broadcast %cst_19 : f32 to vector<128x64xf32>
    %67 = arith.select %65, %42, %66 : vector<128x64xi1>, vector<128x64xf32>
    %68 = arith.truncf %67 : vector<128x64xf32> to vector<128x64xbf16>
    %c0_20 = arith.constant 0 : index
    %c0_21 = arith.constant 0 : index
    %69 = vector.load %arg7[%c0_20, %c0_21] : memref<64x64xbf16, #tpu.memory_space<vmem>>, vector<64x64xbf16>
    %cst_22 = arith.constant dense<0.000000e+00> : vector<128x64xf32>
    %70 = tpu.matmul %68, %69, %cst_22 {dimension_numbers = #tpu.dot_dimension_numbers<[1], [0], [0], [1], [0, 0, 1, 1], [], []>} : vector<128x64xbf16>, vector<64x64xbf16>, vector<128x64xf32> -> vector<128x64xf32>
    %c0_23 = arith.constant 0 : index
    %c0_24 = arith.constant 0 : index
    %71 = vector.load %arg8[%c0_23, %c0_24] : memref<1x64xf32, #tpu.memory_space<vmem>>, vector<1x64xf32>
    %72 = vector.broadcast %71 : vector<1x64xf32> to vector<128x64xf32>
    %73 = arith.addf %70, %72 : vector<128x64xf32>
    %cst_25 = arith.constant 0.000000e+00 : f32
    %74 = vector.broadcast %cst_25 : f32 to vector<128x64xf32>
    %75 = arith.maximumf %73, %74 : vector<128x64xf32>
    %c0_26 = arith.constant 0 : index
    %c0_27 = arith.constant 0 : index
    %76 = vector.load %arg9[%c0_26, %c0_27] : memref<1x64xbf16, #tpu.memory_space<vmem>>, vector<1x64xbf16>
    %77 = arith.truncf %75 : vector<128x64xf32> to vector<128x64xbf16>
    %cst_28 = arith.constant dense<0.000000e+00> : vector<1x128xf32>
    %78 = tpu.matmul %76, %77, %cst_28 {dimension_numbers = #tpu.dot_dimension_numbers<[1], [1], [0], [0], [0, 0, 1, 0], [], []>} : vector<1x64xbf16>, vector<128x64xbf16>, vector<1x128xf32> -> vector<1x128xf32>
    %c0_29 = arith.constant 0 : index
    %c0_30 = arith.constant 0 : index
    %79 = vector.load %arg10[%c0_29, %c0_30] : memref<1x1xf32, #tpu.memory_space<vmem>>, vector<1x1xf32>
    %80 = vector.broadcast %79 : vector<1x1xf32> to vector<1x128xf32>
    %81 = arith.addf %78, %80 : vector<1x128xf32>
    %cst_31 = arith.constant 0.000000e+00 : f32
    %82 = vector.broadcast %cst_31 : f32 to vector<1x128xf32>
    %83 = arith.subf %82, %81 : vector<1x128xf32>
    %84 = math.exp %83 : vector<1x128xf32>
    %cst_32 = arith.constant 1.000000e+00 : f32
    %85 = vector.broadcast %cst_32 : f32 to vector<1x128xf32>
    %86 = arith.addf %85, %84 : vector<1x128xf32>
    %87 = tpu.reciprocal %86 {approx = true} : vector<1x128xf32> -> vector<1x128xf32>
    %cst_33 = arith.constant 0.000000e+00 : f32
    %cst_34 = arith.constant 1.000000e+00 : f32
    %88 = vector.broadcast %cst_33 : f32 to vector<1x128xf32>
    %89 = arith.maximumf %88, %87 : vector<1x128xf32>
    %90 = vector.broadcast %cst_34 : f32 to vector<1x128xf32>
    %91 = arith.minimumf %90, %89 : vector<1x128xf32>
    %c0_35 = arith.constant 0 : index
    %c0_36 = arith.constant 0 : index
    %92 = vector.load %arg11[%c0_35, %c0_36] : memref<1x128xf32, #tpu.memory_space<vmem>>, vector<1x128xf32>
    tpu.vector_store %arg11[%c0_35, %c0_36], %91 {strides = array<i32>} : memref<1x128xf32, #tpu.memory_space<vmem>>, vector<1x128xf32>,
    return
  }
  func.func @transform_0(%arg0: i32) -> i32 {
    %c0_i32 = arith.constant 0 : i32
    %c0_i32_0 = arith.constant 0 : i32
    return %c0_i32 : i32
  }
  func.func @transform_1(%arg0: i32) -> (i32, i32) {
    %c0_i32 = arith.constant 0 : i32
    %c0_i32_0 = arith.constant 0 : i32
    return %arg0, %c0_i32 : i32, i32
  }
  func.func @transform_2(%arg0: i32) -> (i32, i32) {
    %c0_i32 = arith.constant 0 : i32
    %c0_i32_0 = arith.constant 0 : i32
    %c0_i32_1 = arith.constant 0 : i32
    return %c0_i32, %c0_i32_0 : i32, i32
  }
  func.func @transform_3(%arg0: i32) -> (i32, i32) {
    %c0_i32 = arith.constant 0 : i32
    %c0_i32_0 = arith.constant 0 : i32
    %c0_i32_1 = arith.constant 0 : i32
    return %c0_i32, %c0_i32_0 : i32, i32
  }
  func.func @transform_4(%arg0: i32) -> (i32, i32) {
    %c0_i32 = arith.constant 0 : i32
    %c0_i32_0 = arith.constant 0 : i32
    %c0_i32_1 = arith.constant 0 : i32
    return %c0_i32, %c0_i32_0 : i32, i32
  }
  func.func @transform_5(%arg0: i32) -> (i32, i32) {
    %c0_i32 = arith.constant 0 : i32
    %c0_i32_0 = arith.constant 0 : i32
    %c0_i32_1 = arith.constant 0 : i32
    return %c0_i32, %c0_i32_0 : i32, i32
  }
  func.func @transform_6(%arg0: i32) -> (i32, i32) {
    %c0_i32 = arith.constant 0 : i32
    %c0_i32_0 = arith.constant 0 : i32
    %c0_i32_1 = arith.constant 0 : i32
    return %c0_i32, %c0_i32_0 : i32, i32
  }
  func.func @transform_7(%arg0: i32) -> (i32, i32) {
    %c0_i32 = arith.constant 0 : i32
    %c0_i32_0 = arith.constant 0 : i32
    %c0_i32_1 = arith.constant 0 : i32
    return %c0_i32, %c0_i32_0 : i32, i32
  }
  func.func @transform_8(%arg0: i32) -> (i32, i32) {
    %c0_i32 = arith.constant 0 : i32
    %c0_i32_0 = arith.constant 0 : i32
    %c0_i32_1 = arith.constant 0 : i32
    return %c0_i32, %c0_i32_0 : i32, i32
  }
  func.func @transform_9(%arg0: i32) -> (i32, i32) {
    %c0_i32 = arith.constant 0 : i32
    %c0_i32_0 = arith.constant 0 : i32
    %c0_i32_1 = arith.constant 0 : i32
    return %c0_i32, %c0_i32_0 : i32, i32
  }
  func.func @transform_10(%arg0: i32) -> (i32, i32) {
    %c0_i32 = arith.constant 0 : i32
    %c0_i32_0 = arith.constant 0 : i32
    return %c0_i32, %arg0 : i32, i32
  }
}

</mosaic_0001>

<bundles_post_ra>
// kernel: net_mia_forward.1
= control target key start
LH: loop header
LB: loop body
LE: loop exit
PB: predicated region body
PF: predicated region fallthrough
CT: control target
= control target key end

     0   :  { %vm108_vm0 = vcmask 1041408   ;;  %vm83_vm1 = vcmask 162816   ;;  %v225_v38 = vlaneseq  ;;  %s1785_s2 = inlined_call_operand.vmem [shape: bf16[20,128], index: 2, kind: input, shape index: {}]   ;;  %s1786_s1 = inlined_call_operand.vmem [shape: f32[128,20], index: 1, kind: input, shape index: {}]   ;;  %s1787_s4 = inlined_call_operand.vmem [shape: bf16[128,64], index: 4, kind: input, shape index: {}]   ;;  %s1788_s6 = inlined_call_operand.vmem [shape: bf16[64,64], index: 6, kind: input, shape index: {}]   ;;  %s1789_s0 = inlined_call_operand.<no memory space> [shape: s32[1], index: 0, kind: input, shape index: {}]   ;;  %s1790_s3 = inlined_call_operand.vmem [shape: f32[1,128], index: 3, kind: input, shape index: {}]   ;;  %s1791_s5 = inlined_call_operand.vmem [shape: f32[1,64], index: 5, kind: input, shape index: {}]   ;;  %s1792_s9 = inlined_call_operand.<no memory space> [shape: f32[1,1], index: 9, kind: input, shape index: {}]   ;;  %s1793_s7 = inlined_call_operand.vmem [shape: f32[1,64], index: 7, kind: input, shape index: {}]   ;;  %s1794_s8 = inlined_call_operand.vmem [shape: bf16[1,64], index: 8, kind: input, shape index: {}]   ;;  %s1795_s10 = inlined_call_operand.vmem [shape: f32[1,128], index: 10, kind: output, shape index: {}]  }
   0x1   :  { %v1313_v0 = vld [vmem:[%s1785_s2 + $0x8] ss:$0 sps:$4 sm:$0x33]   ;;  %v1314_v1 = vld [vmem:[%s1785_s2] sm:$0xff]   ;;  %v42_v6 = vld [vmem:[%s1786_s1 + $0x10] sm:$0xff] }
   0x2   :  { %v40_v2 = vld [vmem:[%s1786_s1] sm:$0xff]  ;;  %1308 = vmatprep.subr.msk.bf16.mxu0 %vm108_vm0, %v1313_v0  ;;  %v110_v3 = vsel %vm108_vm0, %v1313_v0, 0  ;;  %v41_v4 = vld [vmem:[%s1786_s1 + $0x8] sm:$0xff]  ;;  %v43_v7 = vld [vmem:[%s1786_s1 + $0x18] sm:$0xff]  ;;  %v1484_v39 = vshrl.u32 %v225_v38, 7  ;;  %v1495_v43 = vand.u32 127, %v225_v38 }
   0x3   :  { %1213 = vmatpush3.bf16.msra.mxu0 %v110_v3  ;;  %v56_v5 = vpack.c.bf16 %v41_v4, %v40_v2  ;;  %v44_v8 = vld [vmem:[%s1786_s1 + $0x20] sm:$0xff]  ;;  %v45_v9 = vld [vmem:[%s1786_s1 + $0x28] sm:$0xff]  ;;  %v57_v10 = vpack.c.bf16 %v43_v7, %v42_v6  ;;  %v1315_v12 = vld [vmem:[%s1787_s4 + $0x38] sm:$0xff]   ;;  %s276_s28 = smul.u32 2654435761, %s1789_s0 }
   0x4   :  { %1214 = vmatprep.subr.bf16.mxu0 %v1314_v1  ;;  %v58_v11 = vpack.c.bf16 %v45_v9, %v44_v8  ;;  %v1316_v13 = vld [vmem:[%s1787_s4 + $0x30] sm:$0xff]   ;;  %v47_v15 = vld [vmem:[%s1786_s1 + $0x38] sm:$0xff]  ;;  %1232 = vmatprep.subr.bf16.mxu1 %v1315_v12  ;;  %v48_v16 = vld [vmem:[%s1786_s1 + $0x40] sm:$0xff]  ;;  %v1487_v40 = vadd.s32 8, %v1484_v39  ;;  %v1490_v41 = vadd.s32 16, %v1484_v39  ;;  %v1493_v42 = vadd.s32 24, %v1484_v39 }
   0x5   :  { %1216 = vmatprep.mubr.msk.bf16.mxu0 %vm83_vm1, %v56_v5  ;;  %v46_v14 = vld [vmem:[%s1786_s1 + $0x30] sm:$0xff]  ;;  %v49_v17 = vld [vmem:[%s1786_s1 + $0x48] sm:$0xff]  ;;  %1233 = vmatpush3.bf16.msra.mxu1 %v1315_v12  ;;  %v1318_v21 = vld [vmem:[%s1787_s4 + $0x20] sm:$0xff]   ;;  %v244_v44 = vmul.u32 128, %v1484_v39  ;;  %v1507_v50 = vadd.s32 32, %v1484_v39  ;;  %v1510_v51 = vadd.s32 40, %v1484_v39  ;;  %v1512_v52 = vstv %s276_s28 }
   0x6   :  { %1234 = vmatprep.subr.bf16.mxu1 %v1316_v13  ;;  %v1317_v18 = vld [vmem:[%s1787_s4 + $0x28] sm:$0xff]   ;;  %v59_v19 = vpack.c.bf16 %v47_v15, %v46_v14  ;;  %v60_v20 = vpack.c.bf16 %v49_v17, %v48_v16  ;;  %v50_v22 = vld [vmem:[%s1786_s1 + $0x50] sm:$0xff]  ;;  %v51_v23 = vld [vmem:[%s1786_s1 + $0x58] sm:$0xff]  ;;  %v245_v45 = vmul.u32 128, %v1487_v40  ;;  %v246_v46 = vmul.u32 128, %v1490_v41 }
   0x7   :  { %1215 = vmatpush3.bf16.msra.mxu0 %v1314_v1  ;;  %v1319_v24 = vld [vmem:[%s1787_s4 + $0x18] sm:$0xff]   ;;  %v52_v25 = vld [vmem:[%s1786_s1 + $0x60] sm:$0xff]  ;;  %v53_v26 = vld [vmem:[%s1786_s1 + $0x68] sm:$0xff]  ;;  %v61_v27 = vpack.c.bf16 %v51_v23, %v50_v22  ;;  %v247_v47 = vmul.u32 128, %v1493_v42  ;;  %v260_v48 = vadd.s32 %v244_v44, %v1495_v43  ;;  %v1517_v55 = vadd.s32 48, %v1484_v39 }
   0x8   :  { %v62_v28 = vpack.c.bf16 %v53_v26, %v52_v25  ;;  %v54_v29 = vld [vmem:[%s1786_s1 + $0x70] sm:$0xff]  ;;  %v55_v30 = vld [vmem:[%s1786_s1 + $0x78] sm:$0xff]  ;;  %v1321_v33 = vld [vmem:[%s1787_s4 + $0x8] sm:$0xff]   ;;  %v261_v49 = vadd.s32 %v245_v45, %v1495_v43  ;;  %v262_v53 = vadd.s32 %v246_v46, %v1495_v43  ;;  %v248_v58 = vmul.u32 128, %v1507_v50 }
   0x9   :  { %1235 = vmatpush3.bf16.msra.mxu1 %v1316_v13  ;;  %v63_v31 = vpack.c.bf16 %v55_v30, %v54_v29  ;;  %v1320_v32 = vld [vmem:[%s1787_s4 + $0x10] sm:$0xff]   ;;  %v1322_v34 = vld [vmem:[%s1787_s4] sm:$0xff]   ;;  %v1323_v35 = vld [vmem:[%s1788_s6 + $0x18] sm:$0xff]   ;;  %v263_v54 = vadd.s32 %v247_v47, %v1495_v43  ;;  %v278_v56 = vadd.s32 %v1512_v52, %v260_v48  ;;  %v249_v59 = vmul.u32 128, %v1510_v51 }
   0xa   :  { %1217 = vmatmul.mubr.msk.bf16.vlgmr.msra.gmra.mxu0 %vm83_vm1, %v57_v10  ;;  %1236 = vmatprep.subr.bf16.mxu1 %v1317_v18  ;;  %v1324_v36 = vld [vmem:[%s1788_s6 + $0x10] sm:$0xff]   ;;  %v1325_v37 = vld [vmem:[%s1788_s6 + $0x8] sm:$0xff]   ;;  %v279_v57 = vadd.s32 %v1512_v52, %v261_v49  ;;  %v280_v60 = vadd.s32 %v1512_v52, %v262_v53  ;;  %v1525_v61 = vadd.s32 56, %v1484_v39  ;;  %v250_v63 = vmul.u32 128, %v1517_v55 }
   0xb   :  { %1220 = vmatprep.mubr.msk.bf16.mxu0 %vm83_vm1, %v58_v11  ;;  %1264 = vmatprep.subr.bf16.mxu0 %v1323_v35  ;;  %v281_v62 = vadd.s32 %v1512_v52, %v263_v54  ;;  %v312_v0 = vadd.s32 3266489917, %v278_v56  ;;  %v264_v2 = vadd.s32 %v248_v58, %v1495_v43  ;;  %v265_v3 = vadd.s32 %v249_v59, %v1495_v43 }
   0xc   :  { %1265 = vmatpush3.bf16.msra.mxu0 %v1323_v35  ;;  %v313_v1 = vadd.s32 3266489917, %v279_v57  ;;  %v314_v4 = vadd.s32 3266489917, %v280_v60  ;;  %v251_v5 = vmul.u32 128, %v1525_v61  ;;  %v266_v7 = vadd.s32 %v250_v63, %v1495_v43 }
   0xd   :  { %1237 = vmatpush3.bf16.msra.mxu1 %v1317_v18  ;;  %1266 = vmatprep.subr.bf16.mxu0 %v1324_v36  ;;  %v315_v6 = vadd.s32 3266489917, %v281_v62  ;;  %v328_v8 = vshrl.u32 %v312_v0, 16  ;;  %v282_v10 = vadd.s32 %v1512_v52, %v264_v2  ;;  %v283_v11 = vadd.s32 %v1512_v52, %v265_v3 }
   0xe   :  { %1238 = vmatprep.subr.bf16.mxu1 %v1318_v21  ;;  %v329_v9 = vshrl.u32 %v313_v1, 16  ;;  %v330_v12 = vshrl.u32 %v314_v4, 16  ;;  %v267_v13 = vadd.s32 %v251_v5, %v1495_v43  ;;  %v1537_v14 = vadd.s32 64, %v1484_v39 }
   0xf   :  { %v1540_v15 = vadd.s32 72, %v1484_v39  ;;  %v331_v16 = vshrl.u32 %v315_v6, 16  ;;  %v1543_v17 = vadd.s32 80, %v1484_v39  ;;  %v284_v18 = vadd.s32 %v1512_v52, %v266_v7 }
  0x10   :  { %1267 = vmatpush3.bf16.msra.mxu0 %v1324_v36  ;;  %v316_v22 = vadd.s32 3266489917, %v282_v10  ;;  %v317_v23 = vadd.s32 3266489917, %v283_v11  ;;  %v285_v25 = vadd.s32 %v1512_v52, %v267_v13  ;;  %v252_v26 = vmul.u32 128, %v1537_v14 }
  0x11   :  { %1239 = vmatpush3.bf16.msra.mxu1 %v1318_v21  ;;  %1268 = vmatprep.subr.bf16.mxu0 %v1325_v37  ;;  %v345_v21 = vxor.u32 %v329_v9, %v313_v1  ;;  %v254_v29 = vmul.u32 128, %v1543_v17  ;;  %v318_v30 = vadd.s32 3266489917, %v284_v18  ;;  %v1558_v47 = vadd.s32 96, %v1484_v39 }
  0x12   :  { %1221 = vmatmul.mubr.msk.bf16.gmra.mxu0 %vm83_vm1, %v59_v19  ;;  %1240 = vmatprep.subr.bf16.mxu1 %v1319_v24  ;;  %v1547_v19 = vadd.s32 88, %v1484_v39  ;;  %v333_v35 = vshrl.u32 %v317_v23, 16  ;;  %v268_v38 = vadd.s32 %v252_v26, %v1495_v43  ;;  %v1561_v48 = vadd.s32 104, %v1484_v39 }
  0x13   :  { %1224 = vmatprep.mubr.msk.bf16.mxu0 %vm83_vm1, %v60_v20  ;;  %v344_v20 = vxor.u32 %v328_v8, %v312_v0  ;;  %v270_v46 = vadd.s32 %v254_v29, %v1495_v43  ;;  %v334_v49 = vshrl.u32 %v318_v30, 16  ;;  %v1565_v54 = vadd.s32 112, %v1484_v39 }
  0x14   :  { %1269 = vmatpush3.bf16.msra.mxu0 %v1325_v37  ;;  %v319_v37 = vadd.s32 3266489917, %v285_v25  ;;  %v1568_v56 = vadd.s32 120, %v1484_v39  ;;  %v349_v60 = vxor.u32 %v333_v35, %v317_v23  ;;  %v286_v0 = vadd.s32 %v1512_v52, %v268_v38 }
  0x15   :  { %1241 = vmatpush3.bf16.msra.mxu1 %v1319_v24  ;;  %v346_v24 = vxor.u32 %v330_v12, %v314_v4  ;;  %v288_v3 = vadd.s32 %v1512_v52, %v270_v46  ;;  %v256_v4 = vmul.u32 128, %v1558_v47  ;;  %v257_v5 = vmul.u32 128, %v1561_v48 }
  0x16   :  { %1242 = vmatprep.subr.bf16.mxu1 %v1320_v32  ;;  %v335_v63 = vshrl.u32 %v319_v37, 16  ;;  %v258_v8 = vmul.u32 128, %v1565_v54  ;;  %v259_v9 = vmul.u32 128, %v1568_v56 }
  0x17   :  { %v362_v36 = vmul.u32 2146121005, %v346_v24  ;;  %v365_v13 = vmul.u32 2146121005, %v349_v60  ;;  %v322_v23 = vadd.s32 3266489917, %v288_v3  ;;  %v272_v24 = vadd.s32 %v256_v4, %v1495_v43 }
  0x18   :  { %v351_v18 = vxor.u32 %v335_v63, %v319_v37  ;;  %v273_v25 = vadd.s32 %v257_v5, %v1495_v43  ;;  %v274_v29 = vadd.s32 %v258_v8, %v1495_v43  ;;  %v1588_v37 = vld [vmem:[%s1790_s3] ss:$0 sm:$0xff] }
  0x19   :  { %1243 = vmatpush3.bf16.msra.mxu1 %v1320_v32  ;;  %v360_v32 = vmul.u32 2146121005, %v344_v20  ;;  %v378_v62 = vshrl.u32 %v362_v36, 15  ;;  %v320_v20 = vadd.s32 3266489917, %v286_v0  ;;  %v338_v38 = vshrl.u32 %v322_v23, 16 }
  0x1a   :  { %1225 = vmatmul.mubr.msk.bf16.gmra.mxu0 %vm83_vm1, %v61_v27  ;;  %1244 = vmatprep.subr.bf16.mxu1 %v1321_v33  ;;  %v253_v27 = vmul.u32 128, %v1540_v15 }
  0x1b   :  { %1228 = vmatprep.mubr.msk.bf16.mxu0 %vm83_vm1, %v62_v28  ;;  %v347_v28 = vxor.u32 %v331_v16, %v315_v6  ;;  %v376_v57 = vshrl.u32 %v360_v32, 15  ;;  %v1575_v6 = vxor.u32 %v334_v49, %v318_v30  ;;  %v394_v16 = vxor.u32 %v378_v62, %v362_v36 }
  0x1c   :  { %v269_v44 = vadd.s32 %v253_v27, %v1495_v43  ;;  %v275_v30 = vadd.s32 %v259_v9, %v1495_v43  ;;  %v336_v35 = vshrl.u32 %v320_v20, 16 }
  0x1d   :  { %1245 = vmatpush3.bf16.msra.mxu1 %v1321_v33  ;;  %v361_v33 = vmul.u32 2146121005, %v345_v21  ;;  %v363_v45 = vmul.u32 2146121005, %v347_v28  ;;  %v392_v10 = vxor.u32 %v376_v57, %v360_v32  ;;  %v381_v32 = vshrl.u32 %v365_v13, 15 }
  0x1e   :  { %1246 = vmatprep.subr.bf16.mxu1 %v1322_v34  ;;  %v287_v1 = vadd.s32 %v1512_v52, %v269_v44  ;;  %v366_v27 = vmul.u32 2146121005, %v1575_v6  ;;  %vm410_vm4 = vcmp.ge.u32.totalorder %v394_v16, 1288490189  ;;  %v290_v44 = vadd.s32 %v1512_v52, %v272_v24 }
  0x1f   :  { %v377_v58 = vshrl.u32 %v361_v33, 15  ;;  %v379_v2 = vshrl.u32 %v363_v45, 15  ;;  %vm408_vm2 = vcmp.ge.u32.totalorder %v392_v10, 1288490189  ;;  %v292_v57 = vadd.s32 %v1512_v52, %v274_v29 }
  0x20   :  { %v321_v21 = vadd.s32 3266489917, %v287_v1  ;;  %v382_v49 = vshrl.u32 %v366_v27, 15  ;;  %v397_v63 = vxor.u32 %v381_v32, %v365_v13  ;;  %v352_v3 = vxor.u32 %v336_v35, %v320_v20 }
  0x21   :  { %1247 = vmatpush3.bf16.msra.mxu1 %v1322_v34  ;;  %v332_v34 = vshrl.u32 %v316_v22, 16  ;;  %v393_v11 = vxor.u32 %v377_v58, %v361_v33  ;;  %v293_v58 = vadd.s32 %v1512_v52, %v275_v30  ;;  %v354_v6 = vxor.u32 %v338_v38, %v322_v23 }
  0x22   :  { %1229 = vmatmul.mubr.msk.bf16.gmra.mxu0 %vm83_vm1, %v63_v31  ;;  %v255_v31 = vmul.u32 128, %v1547_v19  ;;  %v337_v36 = vshrl.u32 %v321_v21, 16  ;;  %v368_v23 = vmul.u32 2146121005, %v352_v3  ;;  %vm413_vm9 = vcmp.ge.u32.totalorder %v397_v63, 1288490189 }
  0x23   :  { %v348_v59 = vxor.u32 %v332_v34, %v316_v22  ;;  %v395_v22 = vxor.u32 %v379_v2, %v363_v45  ;;  %vm409_vm3 = vcmp.ge.u32.totalorder %v393_v11, 1288490189  ;;  %v367_v34 = vmul.u32 2146121005, %v351_v18 }
  0x24   :  { %v271_v53 = vadd.s32 %v255_v31, %v1495_v43  ;;  %v291_v45 = vadd.s32 %v1512_v52, %v273_v25  ;;  %v353_v4 = vxor.u32 %v337_v36, %v321_v21  ;;  %v326_v25 = vadd.s32 3266489917, %v292_v57  ;;  %vm1600_vm7 = vmpackc.low %vm409_vm3, %vm408_vm2 }
  0x25   :  { %v364_v12 = vmul.u32 2146121005, %v348_v59  ;;  %vm411_vm5 = vcmp.ge.u32.totalorder %v395_v22, 1288490189  ;;  %v383_v2 = vshrl.u32 %v367_v34, 15 }
  0x26   :  { %v289_v7 = vadd.s32 %v1512_v52, %v271_v53  ;;  %v325_v8 = vadd.s32 3266489917, %v291_v45  ;;  %v327_v29 = vadd.s32 3266489917, %v293_v58  ;;  %vm1606_vm8 = vmpackc.low %vm411_vm5, %vm410_vm4  ;;  %v370_v35 = vmul.u32 2146121005, %v354_v6 }
  0x27   :  { %v380_v31 = vshrl.u32 %v364_v12, 15  ;;  %v399_v21 = vxor.u32 %v383_v2, %v367_v34 }
  0x28   :  { %v323_v28 = vadd.s32 3266489917, %v289_v7  ;;  %v324_v7 = vadd.s32 3266489917, %v290_v44  ;;  %v341_v36 = vshrl.u32 %v325_v8, 16  ;;  %v342_v44 = vshrl.u32 %v326_v25, 16 }
  0x29   :  { %v396_v62 = vxor.u32 %v380_v31, %v364_v12  ;;  %v398_v12 = vxor.u32 %v382_v49, %v366_v27  ;;  %v369_v31 = vmul.u32 2146121005, %v353_v4  ;;  %v343_v45 = vshrl.u32 %v327_v29, 16 }
  0x2a   :  { %v339_v53 = vshrl.u32 %v323_v28, 16  ;;  %v340_v27 = vshrl.u32 %v324_v7, 16  ;;  %vm415_vm11 = vcmp.ge.u32.totalorder %v399_v21, 1288490189  ;;  %v384_v49 = vshrl.u32 %v368_v23, 15 }
  0x2b   :  { %vm412_vm6 = vcmp.ge.u32.totalorder %v396_v62, 1288490189  ;;  %vm414_vm10 = vcmp.ge.u32.totalorder %v398_v12, 1288490189  ;;  %v386_v58 = vshrl.u32 %v370_v35, 15  ;;  %v358_v3 = vxor.u32 %v342_v44, %v326_v25 }
  0x2c   :  { %v355_v24 = vxor.u32 %v339_v53, %v323_v28  ;;  %v385_v53 = vshrl.u32 %v369_v31, 15  ;;  %v359_v4 = vxor.u32 %v343_v45, %v327_v29  ;;  %vm1133_vm12 = vmpackc.low %vm413_vm9, %vm412_vm6 }
  0x2d   :  { %vm1136_vm13 = vmpackc.low %vm415_vm11, %vm414_vm10  ;;  %v374_v29 = vmul.u32 2146121005, %v358_v3 }
  0x2e   :  { %v371_v11 = vmul.u32 2146121005, %v355_v24  ;;  %v400_v24 = vxor.u32 %v384_v49, %v368_v23 }
  0x30   :  { %v387_v2 = vshrl.u32 %v371_v11, 15  ;;  %vm416_vm14 = vcmp.ge.u32.totalorder %v400_v24, 1288490189  ;;  %v632_v24 = vmul.u32 64, %v1484_v39 }
  0x32   :  { %v403_v25 = vxor.u32 %v387_v2, %v371_v11 }
  0x34   :  { %vm419_vm1 = vcmp.ge.u32.totalorder %v403_v25, 1288490189 }
  0xca   :  { %v1218_v26 = vpop.f32.mrf.mxu0 }
  0xcb   :  { %v155_v0 = vadd.f32 %v1218_v26, %v1588_v37 }
  0xcc   :  { %v146_v33 = vpop.f32.mrf.mxu0 }
  0xcd   :  { %v147_v59 = vadd.f32 %v1588_v37, %v146_v33  ;;  %v211_v13 = vmax.f32 %v155_v0, 0.0 }
  0xce   :  { %v1219_v46 = vpop.f32.mrf.mxu0 }
  0xcf   :  { %v158_v60 = vadd.f32 %v1219_v46, %v1588_v37  ;;  %v209_v30 = vmax.f32 %v147_v59, 0.0  ;;  %v356_v59 = vxor.u32 %v340_v27, %v324_v7  ;;  %v402_v7 = vxor.u32 %v386_v58, %v370_v35 }
  0xd0   :  { %v149_v1 = vpop.f32.mrf.mxu0 }
  0xd1   :  { %v150_v5 = vadd.f32 %v1588_v37, %v149_v1  ;;  %v212_v9 = vmax.f32 %v158_v60, 0.0  ;;  %v357_v60 = vxor.u32 %v341_v36, %v325_v8  ;;  %v372_v8 = vmul.u32 2146121005, %v356_v59 }
  0xd2   :  { %v1222_v18 = vpop.f32.mrf.mxu0  ;;  %vm418_vm0 = vcmp.ge.u32.totalorder %v402_v7, 1288490189  ;;  %v390_v36 = vshrl.u32 %v374_v29, 15 }
  0xd3   :  { %v210_v33 = vmax.f32 %v150_v5, 0.0  ;;  %v1131_v38 = vpack.c.bf16 %v212_v9, %v211_v13  ;;  %v171_v16 = vadd.f32 %v1222_v18, %v1588_v37  ;;  %v373_v13 = vmul.u32 2146121005, %v357_v60  ;;  %vm1142_vm3 = vmpackc.low %vm419_vm1, %vm418_vm0 }
  0xd4   :  { %v162_v26 = vpop.f32.mrf.mxu0  ;;  %v388_v21 = vshrl.u32 %v372_v8, 15 }
  0xd5   :  { %v1128_v32 = vpack.c.bf16 %v210_v33, %v209_v30  ;;  %v163_v46 = vadd.f32 %v1588_v37, %v162_v26  ;;  %v215_v9 = vmax.f32 %v171_v16, 0.0  ;;  %v401_v30 = vxor.u32 %v385_v53, %v369_v31 }
  0xd6   :  { %v1223_v10 = vpop.f32.mrf.mxu0  ;;  %v389_v31 = vshrl.u32 %v373_v13, 15  ;;  %v406_v53 = vxor.u32 %v390_v36, %v374_v29 }
  0xd7   :  { %v174_v34 = vadd.f32 %v1223_v10, %v1588_v37  ;;  %1248 = vmatprep.mubr.msk.bf16.mxu1 %vm1600_vm7, %v1128_v32  ;;  %v213_v5 = vmax.f32 %v163_v46, 0.0  ;;  %v375_v32 = vmul.u32 2146121005, %v359_v4  ;;  %vm417_vm15 = vcmp.ge.u32.totalorder %v401_v30, 1288490189 }
  0xd8   :  { %v165_v22 = vpop.f32.mrf.mxu0  ;;  %1249 = vmatmul.mubr.msk.bf16.vlgmr.msra.gmra.mxu1 %vm1606_vm8, %v1131_v38  ;;  %vm1139_vm2 = vmpackc.low %vm417_vm15, %vm416_vm14  ;;  %v405_v16 = vxor.u32 %v389_v31, %v373_v13  ;;  %vm422_vm6 = vcmp.ge.u32.totalorder %v406_v53, 1288490189  ;;  %v635_v30 = vmul.u32 64, %v1493_v42  ;;  %v640_v53 = vmul.u32 64, %v1537_v14 }
  0xd9   :  { %v166_v57 = vadd.f32 %v1588_v37, %v165_v22  ;;  %v216_v0 = vmax.f32 %v174_v34, 0.0  ;;  %v391_v38 = vshrl.u32 %v375_v32, 15  ;;  %v404_v34 = vxor.u32 %v388_v21, %v372_v8 }
  0xda   :  { %v1226_v1 = vpop.f32.mrf.mxu0  ;;  %vm421_vm5 = vcmp.ge.u32.totalorder %v405_v16, 1288490189  ;;  %v648_v8 = vadd.s32 %v632_v24, %v1495_v43  ;;  %v651_v13 = vadd.s32 %v635_v30, %v1495_v43  ;;  %v637_v21 = vmul.u32 64, %v1510_v51 }
  0xdb   :  { %v214_v6 = vmax.f32 %v166_v57, 0.0  ;;  %v1137_v26 = vpack.c.bf16 %v216_v0, %v215_v9  ;;  %v187_v63 = vadd.f32 %v1226_v1, %v1588_v37  ;;  %v407_v57 = vxor.u32 %v391_v38, %v375_v32 }
  0xdc   :  { %v178_v18 = vpop.f32.mrf.mxu0  ;;  %vm420_vm4 = vcmp.ge.u32.totalorder %v404_v34, 1288490189  ;;  %v664_v29 = vadd.s32 %v648_v8, %v1512_v52  ;;  %v667_v42 = vadd.s32 %v651_v13, %v1512_v52  ;;  %v642_v51 = vmul.u32 64, %v1543_v17 }
  0xdd   :  { %v1134_v33 = vpack.c.bf16 %v214_v6, %v213_v5  ;;  %v179_v28 = vadd.f32 %v1588_v37, %v178_v18  ;;  %v219_v44 = vmax.f32 %v187_v63, 0.0  ;;  %vm423_vm7 = vcmp.ge.u32.totalorder %v407_v57, 1288490189  ;;  %vm1145_vm8 = vmpackc.low %vm421_vm5, %vm420_vm4  ;;  %v1326_v18 = vld [vmem:[%s1788_s6] sm:$0xff]  }
  0xde   :  { %v1227_v20 = vpop.f32.mrf.mxu0  ;;  %vm1148_vm9 = vmpackc.low %vm423_vm7, %vm422_vm6  ;;  %1270 = vmatprep.subr.bf16.mxu0 %v1326_v18  ;;  %v696_v63 = vadd.s32 2238012538, %v664_v29  ;;  %vm871_vm14 = vcmask 523264  }
  0xdf   :  { %v190_v62 = vadd.f32 %v1227_v20, %v1588_v37  ;;  %1252 = vmatprep.mubr.msk.bf16.mxu1 %vm1133_vm12, %v1134_v33  ;;  %v217_v10 = vmax.f32 %v179_v28, 0.0  ;;  %1271 = vmatpush3.bf16.msra.mxu0 %v1326_v18  ;;  %v633_v33 = vmul.u32 64, %v1487_v40  ;;  %v638_v20 = vmul.u32 64, %v1517_v55 }
  0xe0   :  { %v181_v23 = vpop.f32.mrf.mxu0  ;;  %1253 = vmatmul.mubr.msk.bf16.gmra.mxu1 %vm1136_vm13, %v1137_v26 }
  0xe1   :  { %v182_v12 = vadd.f32 %v1588_v37, %v181_v23  ;;  %v220_v35 = vmax.f32 %v190_v62, 0.0  ;;  %v649_v26 = vadd.s32 %v633_v33, %v1495_v43  ;;  %v654_v32 = vadd.s32 %v638_v20, %v1495_v43 }
  0xe2   :  { %v1230_v27 = vpop.f32.mrf.mxu0  ;;  %v639_v23 = vmul.u32 64, %v1525_v61 }
  0xe3   :  { %v218_v11 = vmax.f32 %v182_v12, 0.0  ;;  %v1143_v22 = vpack.c.bf16 %v220_v35, %v219_v44  ;;  %v203_v60 = vadd.f32 %v1230_v27, %v1588_v37  ;;  %v665_v40 = vadd.s32 %v649_v26, %v1512_v52 }
  0xe4   :  { %v194_v45 = vpop.f32.mrf.mxu0  ;;  %v699_v12 = vadd.s32 2238012538, %v667_v42  ;;  %v712_v27 = vshrl.u32 %v696_v63, 16  ;;  %v655_v36 = vadd.s32 %v639_v23, %v1495_v43 }
  0xe5   :  { %v1140_v46 = vpack.c.bf16 %v218_v11, %v217_v10  ;;  %v195_v58 = vadd.f32 %v1588_v37, %v194_v45  ;;  %v223_v5 = vmax.f32 %v203_v60, 0.0  ;;  %v697_v55 = vadd.s32 2238012538, %v665_v40 }
  0xe6   :  { %v1231_v49 = vpop.f32.mrf.mxu0  ;;  %v715_v38 = vshrl.u32 %v699_v12, 16  ;;  %v653_v11 = vadd.s32 %v637_v21, %v1495_v43  ;;  %v728_v61 = vxor.u32 %v712_v27, %v696_v63  ;;  %v671_v34 = vadd.s32 %v655_v36, %v1512_v52 }
  0xe7   :  { %v206_v59 = vadd.f32 %v1231_v49, %v1588_v37  ;;  %1256 = vmatprep.mubr.msk.bf16.mxu1 %vm1139_vm2, %v1140_v46  ;;  %v221_v3 = vmax.f32 %v195_v58, 0.0  ;;  %v713_v10 = vshrl.u32 %v697_v55, 16  ;;  %v643_v58 = vmul.u32 64, %v1547_v19 }
  0xe8   :  { %v197_v0 = vpop.f32.mrf.mxu0  ;;  %1257 = vmatmul.mubr.msk.bf16.gmra.mxu1 %vm1142_vm3, %v1143_v22  ;;  %v731_v16 = vxor.u32 %v715_v38, %v699_v12  ;;  %v669_v49 = vadd.s32 %v653_v11, %v1512_v52  ;;  %v647_v40 = vmul.u32 64, %v1568_v56  ;;  %v645_v63 = vmul.u32 64, %v1561_v48  ;;  %v1682_v56 = vld [vmem:[%s1791_s5] ss:$0 sm:$0xff] }
  0xe9   :  { %v198_v1 = vadd.f32 %v1588_v37, %v197_v0  ;;  %v224_v2 = vmax.f32 %v206_v59, 0.0  ;;  %v634_v37 = vmul.u32 64, %v1490_v41  ;;  %v636_v41 = vmul.u32 64, %v1507_v50 }
  0xea   :  { %v670_v50 = vadd.s32 %v654_v32, %v1512_v52  ;;  %v729_v22 = vxor.u32 %v713_v10, %v697_v55  ;;  %v641_v59 = vmul.u32 64, %v1540_v15  ;;  %v701_v17 = vadd.s32 2238012538, %v669_v49 }
  0xeb   :  { %v222_v4 = vmax.f32 %v198_v1, 0.0  ;;  %v1149_v9 = vpack.c.bf16 %v224_v2, %v223_v5  ;;  %v650_v7 = vadd.s32 %v634_v37, %v1495_v43  ;;  %v652_v62 = vadd.s32 %v636_v41, %v1495_v43 }
  0xec   :  { %v702_v44 = vadd.s32 2238012538, %v670_v50  ;;  %v744_v1 = vmul.u32 2146121005, %v728_v61  ;;  %v703_v2 = vadd.s32 2238012538, %v671_v34  ;;  %v659_v18 = vadd.s32 %v643_v58, %v1495_v43 }
  0xed   :  { %v1146_v6 = vpack.c.bf16 %v222_v4, %v221_v3  ;;  %v666_v25 = vadd.s32 %v650_v7, %v1512_v52  ;;  %v668_v35 = vadd.s32 %v652_v62, %v1512_v52  ;;  %v658_v3 = vadd.s32 %v642_v51, %v1495_v43 }
  0xee   :  { %v718_v57 = vshrl.u32 %v702_v44, 16  ;;  %v747_v4 = vmul.u32 2146121005, %v731_v16  ;;  %v745_v5 = vmul.u32 2146121005, %v729_v22  ;;  %v657_v14 = vadd.s32 %v641_v59, %v1495_v43 }
  0xef   :  { %1260 = vmatprep.mubr.msk.bf16.mxu1 %vm1145_vm8, %v1146_v6  ;;  %v698_v28 = vadd.s32 2238012538, %v666_v25  ;;  %v700_v46 = vadd.s32 2238012538, %v668_v35  ;;  %v656_v6 = vadd.s32 %v640_v53, %v1495_v43  ;;  %v760_v24 = vshrl.u32 %v744_v1, 15 }
  0xf0   :  { %1261 = vmatmul.mubr.msk.bf16.gmra.mxu1 %vm1148_vm9, %v1149_v9  ;;  %v734_v9 = vxor.u32 %v718_v57, %v702_v44  ;;  %v719_v15 = vshrl.u32 %v703_v2, 16  ;;  %v674_v30 = vadd.s32 %v658_v3, %v1512_v52  ;;  %v763_v33 = vshrl.u32 %v747_v4, 15 }
  0xf1   :  { %v714_v31 = vshrl.u32 %v698_v28, 16  ;;  %v716_v0 = vshrl.u32 %v700_v46, 16  ;;  %v761_v7 = vshrl.u32 %v745_v5, 15  ;;  %v717_v8 = vshrl.u32 %v701_v17, 16 }
  0xf2   :  { %v672_v13 = vadd.s32 %v656_v6, %v1512_v52  ;;  %v750_v26 = vmul.u32 2146121005, %v734_v9  ;;  %v675_v20 = vadd.s32 %v659_v18, %v1512_v52  ;;  %v673_v25 = vadd.s32 %v657_v14, %v1512_v52 }
  0xf3   :  { %v730_v45 = vxor.u32 %v714_v31, %v698_v28  ;;  %v732_v19 = vxor.u32 %v716_v0, %v700_v46  ;;  %v644_v41 = vmul.u32 64, %v1558_v47  ;;  %v1674_v32 = vxor.u32 %v760_v24, %v744_v1 }
  0xf4   :  { %v735_v28 = vxor.u32 %v719_v15, %v703_v2  ;;  %v706_v62 = vadd.s32 2238012538, %v674_v30  ;;  %v779_v23 = vxor.u32 %v763_v33, %v747_v4  ;;  %v733_v12 = vxor.u32 %v717_v8, %v701_v17 }
  0xf5   :  { %v746_v60 = vmul.u32 2146121005, %v730_v45  ;;  %v748_v42 = vmul.u32 2146121005, %v732_v19  ;;  %v704_v55 = vadd.s32 2238012538, %v672_v13  ;;  %v777_v50 = vxor.u32 %v761_v7, %v745_v5 }
  0xf6   :  { %v646_v21 = vmul.u32 64, %v1565_v54  ;;  %v707_v31 = vadd.s32 2238012538, %v675_v20  ;;  %v705_v35 = vadd.s32 2238012538, %v673_v25  ;;  %v660_v47 = vadd.s32 %v644_v41, %v1495_v43 }
  0xf7   :  { %v762_v37 = vshrl.u32 %v746_v60, 15  ;;  %v766_v27 = vshrl.u32 %v750_v26, 15  ;;  %v764_v36 = vshrl.u32 %v748_v42, 15  ;;  %v663_v38 = vadd.s32 %v647_v40, %v1495_v43 }
  0xf8   :  { %vm792_vm10 = vcmp.ge.u32.totalorder %v1674_v32, 858993459  ;;  %v751_v10 = vmul.u32 2146121005, %v735_v28  ;;  %v722_v11 = vshrl.u32 %v706_v62, 16  ;;  %v661_v54 = vadd.s32 %v645_v63, %v1495_v43 }
  0xf9   :  { %v1671_v29 = vxor.u32 %v762_v37, %v746_v60  ;;  %vm795_vm12 = vcmp.ge.u32.totalorder %v779_v23, 858993459  ;;  %v749_v44 = vmul.u32 2146121005, %v733_v12  ;;  %v720_v45 = vshrl.u32 %v704_v55, 16 }
  0xfa   :  { %v662_v46 = vadd.s32 %v646_v21, %v1495_v43  ;;  %vm793_vm13 = vcmp.ge.u32.totalorder %v777_v50, 858993459  ;;  %v723_v34 = vshrl.u32 %v707_v31, 16  ;;  %v721_v51 = vshrl.u32 %v705_v35, 16 }
  0xfb   :  { %vm794_vm11 = vcmp.ge.u32.totalorder %v1671_v29, 858993459  ;;  %v676_v16 = vadd.s32 %v660_v47, %v1512_v52  ;;  %v1691_v49 = vxor.u32 %v766_v27, %v750_v26  ;;  %v1693_v53 = vxor.u32 %v764_v36, %v748_v42 }
  0xfc   :  { %v679_v57 = vadd.s32 %v663_v38, %v1512_v52  ;;  %v767_v60 = vshrl.u32 %v751_v10, 15  ;;  %v1697_v0 = vxor.u32 %v722_v11, %v706_v62  ;;  %v677_v43 = vadd.s32 %v661_v54, %v1512_v52 }
  0xfd   :  { %v765_v2 = vshrl.u32 %v749_v44, 15  ;;  %v736_v3 = vxor.u32 %v720_v45, %v704_v55  ;;  %v678_v4 = vadd.s32 %v662_v46, %v1512_v52  ;;  %v739_v17 = vxor.u32 %v723_v34, %v707_v31 }
  0xfe   :  { %v737_v6 = vxor.u32 %v721_v51, %v705_v35  ;;  %v708_v9 = vadd.s32 2238012538, %v676_v16  ;;  %v711_v19 = vadd.s32 2238012538, %v679_v57  ;;  %v783_v30 = vxor.u32 %v767_v60, %v751_v10 }
  0xff   :  { %v754_v33 = vmul.u32 2146121005, %v1697_v0  ;;  %v709_v7 = vadd.s32 2238012538, %v677_v43  ;;  %vm798_vm15 = vcmp.ge.u32.totalorder %v1691_v49, 858993459  ;;  %v781_v52 = vxor.u32 %v765_v2, %v749_v44 }
 0x100   :  { %v752_v13 = vmul.u32 2146121005, %v736_v3  ;;  %v710_v26 = vadd.s32 2238012538, %v678_v4  ;;  %v755_v41 = vmul.u32 2146121005, %v739_v17 }
 0x101   :  { %v753_v42 = vmul.u32 2146121005, %v737_v6  ;;  %v724_v40 = vshrl.u32 %v708_v9, 16  ;;  %v727_v12 = vshrl.u32 %v711_v19, 16  ;;  %v725_v35 = vshrl.u32 %v709_v7, 16 }
 0x102   :  { %v768_v36 = vshrl.u32 %v752_v13, 15  ;;  %v726_v38 = vshrl.u32 %v710_v26, 16  ;;  %vm799_vm0 = vcmp.ge.u32.totalorder %v783_v30, 858993459  ;;  %v771_v50 = vshrl.u32 %v755_v41, 15 }
 0x103   :  { %v740_v10 = vxor.u32 %v724_v40, %v708_v9  ;;  %v743_v44 = vxor.u32 %v727_v12, %v711_v19  ;;  %vm796_vm1 = vcmp.ge.u32.totalorder %v1693_v53, 858993459  ;;  %vm797_vm2 = vcmp.ge.u32.totalorder %v781_v52, 858993459 }
 0x104   :  { %v770_v51 = vshrl.u32 %v754_v33, 15  ;;  %v784_v16 = vxor.u32 %v768_v36, %v752_v13 }
 0x105   :  { %v756_v0 = vmul.u32 2146121005, %v740_v10  ;;  %v759_v3 = vmul.u32 2146121005, %v743_v44 }
 0x106   :  { %vm800_vm4 = vcmp.ge.u32.totalorder %v784_v16, 858993459  ;;  %v1744_v16 = vld [vmem:[%s1793_s7] ss:$0 sm:$0xff] }
 0x198   :  { %v1250_v48 = vpop.f32.mrf.mxu1 }
 0x199   :  { %v562_v58 = vadd.f32 %v1250_v48, %v1682_v56  ;;  %v769_v48 = vshrl.u32 %v753_v42, 15 }
 0x19a   :  { %v553_v61 = vpop.f32.mrf.mxu1 }
 0x19b   :  { %v554_v22 = vadd.f32 %v1682_v56, %v553_v61  ;;  %v618_v24 = vmax.f32 %v562_v58, 0.0  ;;  %v741_v61 = vxor.u32 %v725_v35, %v709_v7  ;;  %v785_v60 = vxor.u32 %v769_v48, %v753_v42 }
 0x19c   :  { %v1251_v59 = vpop.f32.mrf.mxu1  ;;  %v775_v7 = vshrl.u32 %v759_v3, 15 }
 0x19d   :  { %v565_v1 = vadd.f32 %v1251_v59, %v1682_v56  ;;  %v616_v18 = vmax.f32 %v554_v22, 0.0  ;;  %v810_v55 = vsel %vm794_vm11, %v618_v24, 0.0  ;;  %v742_v22 = vxor.u32 %v726_v38, %v710_v26 }
 0x19e   :  { %v556_v5 = vpop.f32.mrf.mxu1  ;;  %v787_v59 = vxor.u32 %v771_v50, %v755_v41  ;;  %v757_v6 = vmul.u32 2146121005, %v741_v61  ;;  %v772_v24 = vshrl.u32 %v756_v0, 15  ;;  %vm801_vm5 = vcmp.ge.u32.totalorder %v785_v60, 858993459 }
 0x19f   :  { %v619_v14 = vmax.f32 %v565_v1, 0.0  ;;  %v557_v37 = vadd.f32 %v1682_v56, %v556_v5  ;;  %v808_v28 = vsel %vm792_vm10, %v616_v18, 0.0  ;;  %v786_v18 = vxor.u32 %v770_v51, %v754_v33 }
 0x1a0   :  { %v1254_v15 = vpop.f32.mrf.mxu1  ;;  %vm803_vm3 = vcmp.ge.u32.totalorder %v787_v59, 858993459  ;;  %v773_v33 = vshrl.u32 %v757_v6, 15  ;;  %v788_v41 = vxor.u32 %v772_v24, %v756_v0  ;;  %vm1332_vm11 = vmmov 0  }
 0x1a1   :  { %v617_v8 = vmax.f32 %v557_v37, 0.0  ;;  %v811_v20 = vsel %vm795_vm12, %v619_v14, 0.0  ;;  %v578_v31 = vadd.f32 %v1254_v15, %v1682_v56  ;;  %v758_v37 = vmul.u32 2146121005, %v742_v22 }
 0x1a2   :  { %v569_v25 = vpop.f32.mrf.mxu1  ;;  %v825_v47 = vpack.c.bf16 %v811_v20, %v810_v55  ;;  %vm802_vm6 = vcmp.ge.u32.totalorder %v786_v18, 858993459  ;;  %vm804_vm8 = vcmp.ge.u32.totalorder %v788_v41, 858993459  ;;  %v16_v61 = vstv %s1792_s9 }
 0x1a3   :  { %v809_v62 = vsel %vm793_vm13, %v617_v8, 0.0  ;;  %v570_v63 = vadd.f32 %v1682_v56, %v569_v25  ;;  %v622_v45 = vmax.f32 %v578_v31, 0.0  ;;  %v774_v26 = vshrl.u32 %v758_v37, 15  ;;  %17 = vst [vmem:[#allocation3] sm:$0x1] %v16_v61 }
 0x1a4   :  { %v824_v21 = vpack.c.bf16 %v809_v62, %v808_v28  ;;  %v1255_v23 = vpop.f32.mrf.mxu1  ;;  %v791_v62 = vxor.u32 %v775_v7, %v759_v3  ;;  %v789_v31 = vxor.u32 %v773_v33, %v757_v6 }
 0x1a5   :  { %v581_v27 = vadd.f32 %v1255_v23, %v1682_v56  ;;  %v620_v11 = vmax.f32 %v570_v63, 0.0  ;;  %v814_v53 = vsel %vm798_vm15, %v622_v45, 0.0  ;;  %v790_v35 = vxor.u32 %v774_v26, %v758_v37 }
 0x1a6   :  { %v572_v32 = vpop.f32.mrf.mxu1  ;;  %1272 = vmatprep.mubr.msk.bf16.mxu0 %vm871_vm14, %v824_v21  ;;  %vm807_vm7 = vcmp.ge.u32.totalorder %v791_v62, 858993459  ;;  %vm805_vm9 = vcmp.ge.u32.totalorder %v789_v31, 858993459 }
 0x1a7   :  { %v623_v29 = vmax.f32 %v581_v27, 0.0  ;;  %v573_v54 = vadd.f32 %v1682_v56, %v572_v32  ;;  %1273 = vmatmul.mubr.msk.bf16.vlgmr.msra.gmra.mxu0 %vm871_vm14, %v825_v47  ;;  %v812_v43 = vsel %vm796_vm1, %v620_v11, 0.0  ;;  %vm806_vm10 = vcmp.ge.u32.totalorder %v790_v35, 858993459 }
 0x1a8   :  { %v1258_v46 = vpop.f32.mrf.mxu1 }
 0x1a9   :  { %v621_v34 = vmax.f32 %v573_v54, 0.0  ;;  %v815_v57 = vsel %vm799_vm0, %v623_v29, 0.0  ;;  %v594_v5 = vadd.f32 %v1258_v46, %v1682_v56  ;;  %v1331_v46 = vmov 0.0  }
 0x1aa   :  { %v585_v58 = vpop.f32.mrf.mxu1  ;;  %v827_v9 = vpack.c.bf16 %v815_v57, %v814_v53  ;;  %1288 = vmatprep.subr.bf16.mxu1 %v1331_v46  ;;  %1304 = vmatprep.mubr.msk.bf16.mxu1 %vm1332_vm11, %v1331_v46 }
 0x1ab   :  { %v813_v1 = vsel %vm797_vm2, %v621_v34, 0.0  ;;  %v586_v2 = vadd.f32 %v1682_v56, %v585_v58  ;;  %v626_v8 = vmax.f32 %v594_v5, 0.0  ;;  %v1018_v34 = vld [vmem:[#allocation3] sm:$0x1] }
 0x1ac   :  { %v826_v4 = vpack.c.bf16 %v813_v1, %v812_v43  ;;  %v1259_v17 = vpop.f32.mrf.mxu1 }
 0x1ad   :  { %v597_v14 = vadd.f32 %v1259_v17, %v1682_v56  ;;  %v624_v15 = vmax.f32 %v586_v2, 0.0  ;;  %v818_v63 = vsel %vm802_vm6, %v626_v8, 0.0 }
 0x1ae   :  { %v588_v19 = vpop.f32.mrf.mxu1  ;;  %1276 = vmatprep.mubr.msk.bf16.mxu0 %vm871_vm14, %v826_v4 }
 0x1af   :  { %v627_v30 = vmax.f32 %v597_v14, 0.0  ;;  %v589_v49 = vadd.f32 %v1682_v56, %v588_v19  ;;  %1277 = vmatmul.mubr.msk.bf16.gmra.mxu0 %vm871_vm14, %v827_v9  ;;  %v816_v42 = vsel %vm800_vm4, %v624_v15, 0.0 }
 0x1b0   :  { %v1262_v52 = vpop.f32.mrf.mxu1 }
 0x1b1   :  { %v625_v13 = vmax.f32 %v589_v49, 0.0  ;;  %v819_v20 = vsel %vm803_vm3, %v627_v30, 0.0  ;;  %v610_v55 = vadd.f32 %v1262_v52, %v1682_v56 }
 0x1b2   :  { %v601_v25 = vpop.f32.mrf.mxu1  ;;  %v829_v23 = vpack.c.bf16 %v819_v20, %v818_v63 }
 0x1b3   :  { %v817_v40 = vsel %vm801_vm5, %v625_v13, 0.0  ;;  %v602_v28 = vadd.f32 %v1682_v56, %v601_v25  ;;  %v630_v50 = vmax.f32 %v610_v55, 0.0 }
 0x1b4   :  { %v828_v12 = vpack.c.bf16 %v817_v40, %v816_v42  ;;  %v1263_v21 = vpop.f32.mrf.mxu1 }
 0x1b5   :  { %v613_v47 = vadd.f32 %v1263_v21, %v1682_v56  ;;  %v628_v36 = vmax.f32 %v602_v28, 0.0  ;;  %v822_v54 = vsel %vm806_vm10, %v630_v50, 0.0 }
 0x1b6   :  { %v604_v27 = vpop.f32.mrf.mxu1  ;;  %1280 = vmatprep.mubr.msk.bf16.mxu0 %vm871_vm14, %v828_v12 }
 0x1b7   :  { %v631_v38 = vmax.f32 %v613_v47, 0.0  ;;  %v605_v32 = vadd.f32 %v1682_v56, %v604_v27  ;;  %1281 = vmatmul.mubr.msk.bf16.gmra.mxu0 %vm871_vm14, %v829_v23  ;;  %v820_v11 = vsel %vm804_vm8, %v628_v36, 0.0  ;;  %v1333_v56 = vmov 0  }
 0x1b8   :  { %1312 = vset.pattern.permute.xlu0 %v1333_v56 }
 0x1b9   :  { %v629_v48 = vmax.f32 %v605_v32, 0.0  ;;  %v823_v10 = vsel %vm807_vm7, %v631_v38, 0.0  ;;  %1021 = vperm.xlu0 %1312, %v1018_v34  }
 0x1ba   :  { %v831_v45 = vpack.c.bf16 %v823_v10, %v822_v54 }
 0x1bb   :  { %v821_v29 = vsel %vm805_vm9, %v629_v48, 0.0 }
 0x1bc   :  { %v830_v44 = vpack.c.bf16 %v821_v29, %v820_v11 }
 0x1be   :  { %1284 = vmatprep.mubr.msk.bf16.mxu0 %vm871_vm14, %v830_v44 }
 0x1bf   :  { %1285 = vmatmul.mubr.msk.bf16.gmra.mxu0 %vm871_vm14, %v831_v45 }
 0x267   :  { %v1274_v51 = vpop.f32.mrf.mxu0 }
 0x268   :  { %v939_v57 = vadd.f32 %v1274_v51, %v1744_v16 }
 0x269   :  { %v930_v22 = vpop.f32.mrf.mxu0 }
 0x26a   :  { %v931_v59 = vadd.f32 %v1744_v16, %v930_v22  ;;  %v995_v43 = vmax.f32 %v939_v57, 0.0  ;;  %v1009_v57 = vld [vmem:[%s1794_s8] sm:$0x1] }
 0x26b   :  { %v1275_v58 = vpop.f32.mrf.mxu0 }
 0x26c   :  { %v942_v60 = vadd.f32 %v1275_v58, %v1744_v16  ;;  %v993_v53 = vmax.f32 %v931_v59, 0.0  ;;  %v1026_v58 = vsub.s32 0, %v1484_v39  ;;  %v1022_v59 = vpop.permute.xlu0 %1021 }
 0x26d   :  { %v933_v0 = vpop.f32.mrf.mxu0 }
 0x26e   :  { %v996_v1 = vmax.f32 %v942_v60, 0.0  ;;  %v934_v2 = vadd.f32 %v1744_v16, %v933_v0  ;;  %v1027_v60 = vrot.slane %v1022_v59, %v1026_v58 }
 0x26f   :  { %v1278_v3 = vpop.f32.mrf.mxu0 }
 0x270   :  { %v1011_v4 = vpack.c.bf16 %v996_v1, %v995_v43  ;;  %v994_v5 = vmax.f32 %v934_v2, 0.0  ;;  %v955_v50 = vadd.f32 %v1278_v3, %v1744_v16 }
 0x271   :  { %v946_v17 = vpop.f32.mrf.mxu0 }
 0x272   :  { %v1010_v6 = vpack.c.bf16 %v994_v5, %v993_v53  ;;  %v999_v11 = vmax.f32 %v955_v50, 0.0  ;;  %v947_v44 = vadd.f32 %v1744_v16, %v946_v17  ;;  %v1035_v22 = vsel %vm871_vm14, %v1011_v4, 0 }
 0x273   :  { %v1279_v9 = vpop.f32.mrf.mxu0 }
 0x274   :  { %v958_v38 = vadd.f32 %v1279_v9, %v1744_v16  ;;  %v997_v61 = vmax.f32 %v947_v44, 0.0 }
 0x275   :  { %v949_v18 = vpop.f32.mrf.mxu0 }
 0x276   :  { %v1000_v48 = vmax.f32 %v958_v38, 0.0  ;;  %v950_v54 = vadd.f32 %v1744_v16, %v949_v18 }
 0x277   :  { %v1282_v14 = vpop.f32.mrf.mxu0 }
 0x278   :  { %v971_v63 = vadd.f32 %v1282_v14, %v1744_v16  ;;  %v1013_v29 = vpack.c.bf16 %v1000_v48, %v999_v11  ;;  %v998_v45 = vmax.f32 %v950_v54, 0.0 }
 0x279   :  { %v962_v37 = vpop.f32.mrf.mxu0 }
 0x27a   :  { %v1003_v21 = vmax.f32 %v971_v63, 0.0  ;;  %v963_v35 = vadd.f32 %v1744_v16, %v962_v37  ;;  %v1041_v56 = vsel %vm871_vm14, %v1013_v29, 0  ;;  %v1012_v34 = vpack.c.bf16 %v998_v45, %v997_v61 }
 0x27b   :  { %v1283_v19 = vpop.f32.mrf.mxu0 }
 0x27c   :  { %v974_v28 = vadd.f32 %v1283_v19, %v1744_v16  ;;  %v1001_v36 = vmax.f32 %v963_v35, 0.0  ;;  %v1038_v51 = vsel %vm871_vm14, %v1012_v34, 0 }
 0x27d   :  { %v965_v24 = vpop.f32.mrf.mxu0 }
 0x27e   :  { %v1004_v12 = vmax.f32 %v974_v28, 0.0  ;;  %v966_v23 = vadd.f32 %v1744_v16, %v965_v24 }
 0x27f   :  { %v1286_v15 = vpop.f32.mrf.mxu0 }
 0x280   :  { %v987_v49 = vadd.f32 %v1286_v15, %v1744_v16  ;;  %v1015_v31 = vpack.c.bf16 %v1004_v12, %v1003_v21  ;;  %v1002_v47 = vmax.f32 %v966_v23, 0.0 }
 0x281   :  { %v978_v30 = vpop.f32.mrf.mxu0 }
 0x282   :  { %v1007_v33 = vmax.f32 %v987_v49, 0.0  ;;  %v979_v20 = vadd.f32 %v1744_v16, %v978_v30  ;;  %v1047_v27 = vsel %vm871_vm14, %v1015_v31, 0  ;;  %v1014_v32 = vpack.c.bf16 %v1002_v47, %v1001_v36 }
 0x283   :  { %v1287_v7 = vpop.f32.mrf.mxu0 }
 0x284   :  { %v990_v8 = vadd.f32 %v1287_v7, %v1744_v16  ;;  %v1005_v40 = vmax.f32 %v979_v20, 0.0  ;;  %v1044_v10 = vsel %vm871_vm14, %v1014_v32, 0 }
 0x285   :  { %v981_v52 = vpop.f32.mrf.mxu0 }
 0x286   :  { %v1008_v13 = vmax.f32 %v990_v8, 0.0  ;;  %v982_v26 = vadd.f32 %v1744_v16, %v981_v52  ;;  %v1032_v16 = vsel %vm871_vm14, %v1010_v6, 0 }
 0x288   :  { %v1017_v25 = vpack.c.bf16 %v1008_v13, %v1007_v33  ;;  %v1006_v41 = vmax.f32 %v982_v26, 0.0 }
 0x28a   :  { %v1053_v42 = vsel %vm871_vm14, %v1017_v25, 0  ;;  %v1016_v62 = vpack.c.bf16 %v1006_v41, %v1005_v40 }
 0x28b   :  { %1289 = vmatpush3.bf16.xpose.msra.mxu1 %v1053_v42 }
 0x28c   :  { %1290 = vmatprep.subr.bf16.mxu1 %v1331_v46  ;;  %v1050_v55 = vsel %vm871_vm14, %v1016_v62, 0 }
 0x293   :  { %1291 = vmatpush3.bf16.xpose.msra.mxu1 %v1050_v55 }
 0x294   :  { %1292 = vmatprep.subr.bf16.mxu1 %v1331_v46 }
 0x29b   :  { %1293 = vmatpush3.bf16.xpose.msra.mxu1 %v1047_v27 }
 0x29c   :  { %1294 = vmatprep.subr.bf16.mxu1 %v1331_v46 }
 0x2a3   :  { %1295 = vmatpush3.bf16.xpose.msra.mxu1 %v1044_v10 }
 0x2a4   :  { %1296 = vmatprep.subr.bf16.mxu1 %v1331_v46 }
 0x2ab   :  { %1297 = vmatpush3.bf16.xpose.msra.mxu1 %v1041_v56 }
 0x2ac   :  { %1298 = vmatprep.subr.bf16.mxu1 %v1331_v46 }
 0x2b3   :  { %1299 = vmatpush3.bf16.xpose.msra.mxu1 %v1038_v51 }
 0x2b4   :  { %1300 = vmatprep.subr.bf16.mxu1 %v1331_v46 }
 0x2bb   :  { %1301 = vmatpush3.bf16.xpose.msra.mxu1 %v1035_v22 }
 0x2bc   :  { %1302 = vmatprep.subr.bf16.mxu1 %v1331_v46 }
 0x2c3   :  { %1303 = vmatpush3.bf16.xpose.msra.mxu1 %v1032_v16 }
 0x2ca   :  { %1305 = vmatmul.mubr.msk.bf16.vlgmr.msra.gmra.mxu1 %vm871_vm14, %v1009_v57 }
 0x38a   :  { %v1089_v0 = vpop.f32.mrf.mxu1 }
 0x38b   :  { %v1090_v43 = vadd.f32 %v1089_v0, %v1027_v60 }
 0x38c   :  { %v1306_v1 = vpop.f32.mrf.mxu1 }
 0x38d   :  { %v1095_v2 = vsub.f32 0.0, %v1090_v43 }
 0x38e   :  { %v1092_v3 = vpop.f32.mrf.mxu1 }
 0x38f   :  { %v1096_v53 = vmul.f32 1.442695, %v1095_v2 }
 0x390   :  { %v1307_v46 = vpop.f32.mrf.mxu1 }
 0x391   :  { %1327 = vpow2.f32 %v1096_v53 }
 0x39e   :  { %v1328_v4 = vpop.eup %1327 }
 0x39f   :  { %v1098_v5 = vadd.f32 1.0, %v1328_v4 }
 0x3a1   :  { %1329 = vrcp.f32 %v1098_v5 }
 0x3ae   :  { %v1330_v17 = vpop.eup %1329 }
 0x3af   :  { %v1100_v6 = vmax.f32 %v1330_v17, 0.0 }
 0x3b1   :  { %v1101_v9 = vmin.f32 %v1100_v6, 1.0 }
 0x3b3   :  { %1102 = vst [vmem:[%s1795_s10] sm:$0x1] %v1101_v9 }

</bundles_post_ra>
